<compile_context>
chip_gen: v7x
topology: tpu7x:2x2x1
jax: 0.10.0
libtpu: 0.0.40
codegen_flags: <defaults>
</compile_context>

<pallas_src>
import functools

import numpy as np

import jax
import jax.numpy as jnp
from jax import lax
from jax.experimental import pallas as pl
from jax.experimental.pallas import tpu as pltpu

EPS = 1e-5


# ----------------------------------------------------------------------------
# pltpu.roll direction probe.
# We need shifted[:, p] = a[:, (p + s) % M] == jnp.roll(a, -s, axis=1).
# pltpu.roll is expected to follow jnp.roll semantics; probe it once (OUTSIDE
# any jit trace) so a convention flip cannot silently corrupt the conv.
# ----------------------------------------------------------------------------
@functools.lru_cache(maxsize=None)
def _roll_matches_jnp():
    def probe(x_ref, o_ref):
        o_ref[...] = pltpu.roll(x_ref[...], 1, axis=1)

    x = jnp.arange(8 * 128, dtype=jnp.float32).reshape(8, 128)
    y = pl.pallas_call(
        probe, out_shape=jax.ShapeDtypeStruct((8, 128), jnp.float32))(x)
    # jnp.roll(x, 1, axis=1)[0, 0] == x[0, 127] == 127.
    return bool(y[0, 0] == 127.0)


# ----------------------------------------------------------------------------
# Fused kernel
# ----------------------------------------------------------------------------
def _bn_scale_bias(h, gamma, beta):
    """Training-mode BatchNorm folded to (scale, bias); stats over lane axis."""
    inv_m = 1.0 / h.shape[1]
    mean = jnp.sum(h, axis=1, keepdims=True) * inv_m
    centered = h - mean
    var = jnp.sum(centered * centered, axis=1, keepdims=True) * inv_m
    scale = gamma * lax.rsqrt(var + EPS)
    bias = beta - mean * scale
    return scale, bias


def _bottleneck_kernel(x_ref, w1_ref, w2_ref, w3_ref, ws_ref,
                       g1_ref, b1_ref, g2_ref, b2_ref, g3_ref, b3_ref,
                       gs_ref, bs_ref, mask_ref, out_ref,
                       *, dims, roll_is_jnp):
    _, H, W = dims
    x = x_ref[...]                                        # (Cin, M)
    M = x.shape[1]

    # --- stage 1: conv1 (1x1x1) -> bn1 -> relu (dropout = Identity) ---------
    h1 = jnp.dot(w1_ref[...], x, preferred_element_type=jnp.float32)
    s1, t1 = _bn_scale_bias(h1, g1_ref[...], b1_ref[...])
    a1 = jnp.maximum(h1 * s1 + t1, 0.0)                   # (C1p, M)

    # --- stage 2: conv2 (3x3x3, pad=1) as 27 masked shifted matmuls ---------
    h2 = jnp.zeros_like(a1)
    k = 0
    for dz in (-1, 0, 1):
        for dy in (-1, 0, 1):
            for dx in (-1, 0, 1):
                shift = dz * H * W + dy * W + dx          # flat-index offset
                if shift == 0:
                    shifted = a1
                else:
                    # shifted[:, p] = a1[:, (p + shift) % M]; out-of-range /
                    # wrapped positions are zeroed by the boundary mask.
                    amount = (-shift) % M if roll_is_jnp else shift % M
                    shifted = pltpu.roll(a1, amount, axis=1)
                contrib = jnp.dot(w2_ref[k], shifted,
                                  preferred_element_type=jnp.float32)
                if shift == 0:
                    h2 = h2 + contrib                     # mask is all ones
                else:
                    h2 = h2 + contrib * mask_ref[k]       # (1, M) mask
                k += 1
    s2, t2 = _bn_scale_bias(h2, g2_ref[...], b2_ref[...])
    a2 = jnp.maximum(h2 * s2 + t2, 0.0)

    # --- stage 3: conv3 (1x1x1) -> bn3 ---------------------------------------
    h3 = jnp.dot(w3_ref[...], a2, preferred_element_type=jnp.float32)
    s3, t3 = _bn_scale_bias(h3, g3_ref[...], b3_ref[...])

    # --- shortcut: conv (1x1x1) -> bn ----------------------------------------
    hs = jnp.dot(ws_ref[...], x, preferred_element_type=jnp.float32)
    ss, ts = _bn_scale_bias(hs, gs_ref[...], bs_ref[...])

    # --- residual add + relu -------------------------------------------------
    out_ref[...] = jnp.maximum(h3 * s3 + t3 + hs * ss + ts, 0.0)


# ----------------------------------------------------------------------------
# Host-side glue (tiny, trace-time constants / layout prep)
# ----------------------------------------------------------------------------
def _conv_boundary_masks(N, D, H, W):
    """(27, 1, M) f32 masks: 1 where the shifted source voxel is in-bounds."""
    d = np.arange(D)[:, None, None]
    h = np.arange(H)[None, :, None]
    w = np.arange(W)[None, None, :]
    rows = []
    for dz in (-1, 0, 1):
        for dy in (-1, 0, 1):
            for dx in (-1, 0, 1):
                valid = ((d + dz >= 0) & (d + dz < D) &
                         (h + dy >= 0) & (h + dy < H) &
                         (w + dx >= 0) & (w + dx < W))
                rows.append(np.broadcast_to(valid, (N, D, H, W)).reshape(1, -1))
    return jnp.asarray(np.stack(rows, axis=0).astype(np.float32))


def _round_up(v, m):
    return (v + m - 1) // m * m


def _prep_kernel_params(p):
    """Torch-layout params -> (C_out, C_in) matmul layouts, channel-padded."""
    planes, cin = p["w1"].shape[0], p["w1"].shape[1]
    cout = p["w3"].shape[0]
    c1p = _round_up(planes, 8)
    po = c1p - planes

    w1 = jnp.pad(p["w1"].reshape(planes, cin), ((0, po), (0, 0)))
    w2 = jnp.transpose(p["w2"], (2, 3, 4, 0, 1)).reshape(27, planes, planes)
    w2 = jnp.pad(w2, ((0, 0), (0, po), (0, po)))
    w3 = jnp.pad(p["w3"].reshape(cout, planes), ((0, 0), (0, po)))
    ws = p["ws"].reshape(cout, cin)

    def col(v, pad):
        return jnp.pad(v, (0, pad)).reshape(-1, 1)

    return dict(
        w1=w1, w2=w2, w3=w3, ws=ws,
        g1=col(p["g1"], po), b1=col(p["b1"], po),
        g2=col(p["g2"], po), b2=col(p["b2"], po),
        g3=col(p["g3"], 0), b3=col(p["b3"], 0),
        gs=col(p["gs"], 0), bs=col(p["bs"], 0),
    )


def ilpo_bottleneck_forward(x, params):
    """x: (N, Cin, D, H, W) f32 NCDHW -> (N, 4*planes, D, H, W) f32."""
    N, cin, D, H, W = x.shape
    M = N * D * H * W
    kp = _prep_kernel_params(params)
    cout = kp["w3"].shape[0]

    # Lane-dense (C, M) activation layout (tiny one-time relayout).
    x_cm = x.reshape(N, cin, D * H * W).transpose(1, 0, 2).reshape(cin, M)
    masks = _conv_boundary_masks(N, D, H, W)

    kernel = functools.partial(
        _bottleneck_kernel, dims=(D, H, W), roll_is_jnp=_roll_matches_jnp())

    inputs = (x_cm, kp["w1"], kp["w2"], kp["w3"], kp["ws"],
              kp["g1"], kp["b1"], kp["g2"], kp["b2"], kp["g3"], kp["b3"],
              kp["gs"], kp["bs"], masks)

    out_cm = pl.pallas_call(
        kernel,
        out_shape=jax.ShapeDtypeStruct((cout, M), jnp.float32),
        in_specs=[pl.BlockSpec(memory_space=pltpu.MemorySpace.VMEM)
                  for _ in inputs],
        out_specs=pl.BlockSpec(memory_space=pltpu.MemorySpace.VMEM),
    )(*inputs)

    return out_cm.reshape(cout, N, D, H, W).transpose(1, 0, 2, 3, 4)


# ----------------------------------------------------------------------------
# Pure-JAX reference (independent of the kernel's roll/mask formulation)
# ----------------------------------------------------------------------------
def _conv3d(x, w, padding):
    return lax.conv_general_dilated(
        x, w, window_strides=(1, 1, 1),
        padding=[(padding, padding)] * 3,
        dimension_numbers=("NCDHW", "OIDHW", "NCDHW"),
        precision=lax.Precision.HIGHEST)


def _bn_train_ref(x, gamma, beta):
    mean = jnp.mean(x, axis=(0, 2, 3, 4), keepdims=True)
    var = jnp.mean(jnp.square(x - mean), axis=(0, 2, 3, 4), keepdims=True)
    g = gamma.reshape(1, -1, 1, 1, 1)
    b = beta.reshape(1, -1, 1, 1, 1)
    return g * (x - mean) * lax.rsqrt(var + EPS) + b


def reference_forward(x, p):
    out = jax.nn.relu(_bn_train_ref(_conv3d(x, p["w1"], 0), p["g1"], p["b1"]))
    out = jax.nn.relu(_bn_train_ref(_conv3d(out, p["w2"], 1), p["g2"], p["b2"]))
    out = _bn_train_ref(_conv3d(out, p["w3"], 0), p["g3"], p["b3"])
    sc = _bn_train_ref(_conv3d(x, p["ws"], 0), p["gs"], p["bs"])
    return jax.nn.relu(out + sc)


def make_params(key, in_planes=8, planes=4, expansion=4):
    ks = jax.random.split(key, 10)
    cout = expansion * planes
    return {
        # Conv weights in PyTorch OIDHW layout.
        "w1": 0.3 * jax.random.normal(ks[0], (planes, in_planes, 1, 1, 1),
                                      jnp.float32),
        "w2": 0.1 * jax.random.normal(ks[1], (planes, planes, 3, 3, 3),
                                      jnp.float32),
        "w3": 0.3 * jax.random.normal(ks[2], (cout, planes, 1, 1, 1),
                                      jnp.float32),
        "ws": 0.3 * jax.random.normal(ks[3], (cout, in_planes, 1, 1, 1),
                                      jnp.float32),
        # BatchNorm affine params.
        "g1": 1.0 + 0.1 * jax.random.normal(ks[4], (planes,), jnp.float32),
        "b1": 0.05 * jax.random.normal(ks[5], (planes,), jnp.float32),
        "g2": 1.0 + 0.1 * jax.random.normal(ks[6], (planes,), jnp.float32),
        "b2": 0.05 * jax.random.normal(ks[7], (planes,), jnp.float32),
        "g3": 1.0 + 0.1 * jax.random.normal(ks[8], (cout,), jnp.float32),
        "b3": 0.05 * jax.random.normal(ks[9], (cout,), jnp.float32),
        "gs": jnp.ones((cout,), jnp.float32),
        "bs": jnp.zeros((cout,), jnp.float32),
    }


if __name__ == "__main__":
    # Resolve the pltpu.roll direction once, outside of any jit trace.
    _roll_matches_jnp()

    key = jax.random.PRNGKey(0)
    kx, kparam = jax.random.split(key)

    N, in_planes, D, H, W = 2, 8, 8, 8, 8       # M = N*D*H*W = 1024
    planes = 4
    x = jax.random.normal(kx, (N, in_planes, D, H, W), jnp.float32)
    params = make_params(kparam, in_planes=in_planes, planes=planes)

    fwd = jax.jit(ilpo_bottleneck_forward)
    out = jax.block_until_ready(fwd(x, params))

    ref = jax.block_until_ready(jax.jit(reference_forward)(x, params))

    assert out.shape == (N, 4 * planes, D, H, W), out.shape
    max_err = float(jnp.max(jnp.abs(out - ref)))
    assert jnp.allclose(out, ref, rtol=2e-3, atol=2e-3), max_err
    print("KERNEL_OK")
</pallas_src>

<mosaic_0001>
module attributes {stable_mosaic.version = 11 : i64} {
  func.func @probe(%arg0: memref<8x128xf32, #tpu.memory_space<vmem>>, %arg1: memref<8x128xf32, #tpu.memory_space<vmem>>) attributes {dimension_semantics = [], scalar_prefetch = 0 : i64, scratch_operands = 0 : i64, tpu.core_type = #tpu.core_type<tc>} {
    %c0 = arith.constant 0 : index
    %c0_0 = arith.constant 0 : index
    %0 = vector.load %arg0[%c0, %c0_0] : memref<8x128xf32, #tpu.memory_space<vmem>>, vector<8x128xf32>
    %c1_i32 = arith.constant 1 : i32
    %1 = tpu.dynamic_rotate %0 by %c1_i32 dim 1 : vector<8x128xf32>, i32 -> vector<8x128xf32>
    %c0_1 = arith.constant 0 : index
    %c0_2 = arith.constant 0 : index
    %2 = vector.load %arg1[%c0_1, %c0_2] : memref<8x128xf32, #tpu.memory_space<vmem>>, vector<8x128xf32>
    tpu.vector_store %arg1[%c0_1, %c0_2], %1 {strides = array<i32>} : memref<8x128xf32, #tpu.memory_space<vmem>>, vector<8x128xf32>,
    return
  }
}

</mosaic_0001>

<bundles_post_ra>
// kernel: tpu_custom_call.1
= control target key start
LH: loop header
LB: loop body
LE: loop exit
PB: predicated region body
PF: predicated region fallthrough
CT: control target
= control target key end

     0   :  { %6 = vsyncpa [#allocation3], 0  ;;  %s128_s0 = inlined_call_operand.hbm [shape: f32[8,128], index: 0, kind: input, shape index: {}]   ;;  %s129_s1 = inlined_call_operand.hbm [shape: f32[8,128], index: 1, kind: output, shape index: {}]  }
   0x1   :  { %7 = vsyncpa [#allocation4], 0  ;;  %s91_s6 = smov [#allocation2]   ;;  %s43_s10 = scalar_lea.hbm %s128_s0, 128 }
   0x2   :  { %s14_s7 = sshll.u32 %s91_s6, 4  ;;  %p44_p0 = scmp.ne.s32.totalorder %s128_s0, %s43_s10  ;;  %s15_s7 = int_to_ptr.vmem [resolvable:$true] %s14_s7 }
   0x3   :  { %p47_p1 = scmp.lt.u32.totalorder %s43_s10, %s128_s0 }
   0x5   :  { %p49_p2 = pnand %p47_p1, %p44_p0 }
   0x7   :  { %52 = shalt.err (!%p49_p2)
}
   0x8   :  { %s53_s15 = scalar_lea.vmem %s15_s7, 128  ;;  %p58_p4 = scmp.lt.s32.totalorder %s15_s7, %s15_s7 }
   0x9   :  { %p54_p3 = scmp.ne.s32.totalorder %s15_s7, %s53_s15  ;;  %p59_p5 = scmp.lt.s32.totalorder %s53_s15, %s53_s15 }
   0xb   :  { %p60_p6 = por %p59_p5, %p58_p4 }
   0xd   :  { %p61_p7 = pnand %p60_p6, %p54_p3 }
   0xf   :  { %64 = shalt.err (!%p61_p7)
}
  0x10   :  { %17 = dma.hbm_to_vmem [thread:$0]  %s128_s0, 128, %s15_s7, [#allocation3]  }
  0x11   :  { %87 = dma.done.wait [#allocation3], 128  }
  0x12   :  { %88 = vsyncadd [#allocation3], 4294967168  ;;  %v21_v0 = vld [vmem:[#allocation2] sm:$0xff]  ;;  %s92_s18 = smov 1   ;;  %s93_s19 = smov [#allocation5]  }
  0x13   :  { %22 = vrot.lane.b32.xlu0 %v21_v0, %s92_s18  ;;  %s31_s20 = sshll.u32 %s93_s19, 4  ;;  %s32_s20 = int_to_ptr.vmem [resolvable:$true] %s31_s20 }
  0x14   :  { %s65_s21 = scalar_lea.vmem %s32_s20, 128  ;;  %p70_p9 = scmp.lt.s32.totalorder %s32_s20, %s32_s20 }
  0x15   :  { %p66_p8 = scmp.ne.s32.totalorder %s32_s20, %s65_s21  ;;  %p71_p10 = scmp.lt.s32.totalorder %s65_s21, %s65_s21 }
  0x17   :  { %p72_p11 = por %p71_p10, %p70_p9 }
  0x19   :  { %p73_p12 = pnand %p72_p11, %p66_p8 }
  0x85   :  { %v23_v1 = vpop.permute.xlu0 %22 }
  0x86   :  { %24 = vst [vmem:[#allocation5] sm:$0xff] %v23_v1 }
  0x87   :  { %76 = shalt.err (!%p73_p12)
}
  0x88   :  { %s77_s0 = scalar_lea.hbm %s129_s1, 128 }
  0x89   :  { %p78_p13 = scmp.ne.s32.totalorder %s129_s1, %s77_s0  ;;  %p81_p0 = scmp.lt.u32.totalorder %s77_s0, %s129_s1 }
  0x8b   :  { %p83_p1 = pnand %p81_p0, %p78_p13 }
  0x8d   :  { %86 = shalt.err (!%p83_p1)
}
  0x8e   :  { %34 = dma.vmem_to_hbm [thread:$0]  %s32_s20, 128, %s129_s1, [#allocation4]  }
  0x8f   :  { %89 = dma.done.wait [#allocation4], 128  }
  0x90   :  { %90 = vsyncadd [#allocation4], 4294967168 }
  0x91   :  { %38 = vsyncpa [#allocation3], 1 }
  0x92   :  { %39 = vsyncpa [#allocation4], 1 }

</bundles_post_ra>
